<compile_context>
chip_gen: v7x
topology: tpu7x:2x2x1
jax: 0.10.0
libtpu: 0.0.40
codegen_flags: <defaults>
</compile_context>

<pallas_src>
import jax
import jax.numpy as jnp
from jax.experimental import pallas as pl
from jax.experimental.pallas import tpu as pltpu


def _round_up(x, m):
    return ((x + m - 1) // m) * m


def _choose_b_tile(B, S, D, itemsize=2, budget_bytes=24 * 1024 * 1024):
    """Largest multiple-of-8 divisor of B whose double-buffered text tile fits
    the VMEM budget (kept small enough for v7x's 64 MiB VMEM). Falls back to a
    single full-batch block (block == full dim is always layout-legal)."""
    per_row = S * D * itemsize
    best = None
    for cand in range(8, B + 1, 8):
        if B % cand == 0 and 2 * cand * per_row <= budget_bytes:
            best = cand
    return best if best is not None else B


def bert_rel_att_kernel(q_ref, t_ref,
                        wq_ref, bq_ref,
                        wh_ref, bh_ref,
                        wo_ref, bo_ref,
                        out_ref):
    # Upcast streamed bf16 tiles to f32 (v5e VPU has no bf16 elementwise path).
    q = q_ref[...].astype(jnp.float32)            # (Bt, D)
    t = t_ref[...].astype(jnp.float32)            # (Bt, S, D)

    # dotProducSimi: keep off the MXU (would be B one-row matmuls).
    # Broadcast-multiply (VPU) + lane reduce over D (XLU).
    scores = jnp.sum(q[:, None, :] * t, axis=-1)                       # (Bt, S)

    # Softmax over the sequence axis (== Softmax(dim=1) on the (B*1, S) view).
    m = jnp.max(scores, axis=-1, keepdims=True)
    e = jnp.exp(scores - m)
    denom = jnp.sum(e, axis=-1, keepdims=True)
    p = e * pl.reciprocal(denom, approx=True)                          # (Bt, S)

    # attVector / weightedSum: broadcast-multiply + sublane reduce over S.
    att = jnp.sum(p[:, :, None] * t, axis=1)                           # (Bt, D)

    # weightedSum = relu(q_linear(weightedSum))   (padded, lane-dense weights)
    h1 = jnp.dot(att, wq_ref[...], preferred_element_type=jnp.float32) + bq_ref[...]
    h1 = jnp.maximum(h1, 0.0)                                          # (Bt, A_pad)

    # hidden = SimpleHidden(qt_rep)  (Linear + ReLU)
    h2 = jnp.dot(h1, wh_ref[...], preferred_element_type=jnp.float32) + bh_ref[...]
    h2 = jnp.maximum(h2, 0.0)                                          # (Bt, H_pad)

    # out = layer_output(hidden)  -> lane-dense (Bt, 128) unmasked store
    out = jnp.dot(h2, wo_ref[...], preferred_element_type=jnp.float32) + bo_ref[...]
    out_ref[...] = out.astype(out_ref.dtype)                           # (Bt, C_pad)


def bert_rel_att_forward(question_cls, text_rep, params, b_tile=None):
    """Fused attention + MLP head. Returns {'y_hat': out, 'cls_att': out}."""
    B, D = question_cls.shape
    _, S, _ = text_rep.shape
    A = params['wq'].shape[1]
    H = params['wh'].shape[1]
    C = params['wo'].shape[1]

    # ---- lane-dense (128-aligned) zero-padded weights; one-time layout work ----
    A_pad, H_pad, C_pad = _round_up(A, 128), _round_up(H, 128), _round_up(C, 128)
    wq = jnp.pad(params['wq'], ((0, 0), (0, A_pad - A))).astype(jnp.float32)
    bq = jnp.pad(params['bq'], ((0, 0), (0, A_pad - A))).astype(jnp.float32)
    wh = jnp.pad(params['wh'], ((0, A_pad - A), (0, H_pad - H))).astype(jnp.float32)
    bh = jnp.pad(params['bh'], ((0, 0), (0, H_pad - H))).astype(jnp.float32)
    wo = jnp.pad(params['wo'], ((0, H_pad - H), (0, C_pad - C))).astype(jnp.float32)
    bo = jnp.pad(params['bo'], ((0, 0), (0, C_pad - C))).astype(jnp.float32)

    # ---- stream activations in bf16, accumulate in f32 inside the kernel ----
    q_bf = question_cls.astype(jnp.bfloat16)
    t_bf = text_rep.astype(jnp.bfloat16)

    if b_tile is None:
        b_tile = _choose_b_tile(B, S, D)
    assert B % b_tile == 0
    grid = (B // b_tile,)

    weights = (wq, bq, wh, bh, wo, bo)
    flops = int(2 * B * S * D          # scores
                + 2 * B * S * D        # weighted sum
                + 2 * B * (D * A_pad + A_pad * H_pad + H_pad * C_pad))
    bytes_accessed = int(q_bf.size * 2 + t_bf.size * 2
                         + sum(w.size * 4 for w in weights)
                         + B * C_pad * 4)
    cost = pl.CostEstimate(flops=flops,
                           transcendentals=int(B * S + B),
                           bytes_accessed=bytes_accessed)

    const = lambda i: (0, 0)  # weights: same block every grid step -> VMEM-resident
    out_padded = pl.pallas_call(
        bert_rel_att_kernel,
        out_shape=jax.ShapeDtypeStruct((B, C_pad), jnp.float32),
        grid_spec=pltpu.PrefetchScalarGridSpec(
            num_scalar_prefetch=0,
            grid=grid,
            in_specs=[
                pl.BlockSpec((b_tile, D), lambda i: (i, 0)),        # question_cls
                pl.BlockSpec((b_tile, S, D), lambda i: (i, 0, 0)),  # text_rep (streamed)
                pl.BlockSpec(wq.shape, const),
                pl.BlockSpec(bq.shape, const),
                pl.BlockSpec(wh.shape, const),
                pl.BlockSpec(bh.shape, const),
                pl.BlockSpec(wo.shape, const),
                pl.BlockSpec(bo.shape, const),
            ],
            out_specs=pl.BlockSpec((b_tile, C_pad), lambda i: (i, 0)),
        ),
        compiler_params=pltpu.CompilerParams(
            dimension_semantics=("parallel",),          # batch tiles independent (2 TCs on v7x)
            vmem_limit_bytes=64 * 1024 * 1024,
        ),
        cost_estimate=cost,
    )(q_bf, t_bf, wq, bq, wh, bh, wo, bo)

    out = out_padded[:, :C]
    return {'y_hat': out, 'cls_att': out}


def init_params(key, bert_dim, att_out_dim, hidden_dim, n_classes):
    """Deterministic parameter init. Weights stored pre-transposed as (in, out)
    so the kernel computes y = x @ W + b (PyTorch Linear semantics)."""
    ks = jax.random.split(key, 6)
    scale = 0.02
    return {
        'wq': (scale * jax.random.normal(ks[0], (bert_dim, att_out_dim))).astype(jnp.float32),
        'bq': (scale * jax.random.normal(ks[1], (1, att_out_dim))).astype(jnp.float32),
        'wh': (scale * jax.random.normal(ks[2], (att_out_dim, hidden_dim))).astype(jnp.float32),
        'bh': (scale * jax.random.normal(ks[3], (1, hidden_dim))).astype(jnp.float32),
        'wo': (scale * jax.random.normal(ks[4], (hidden_dim, n_classes))).astype(jnp.float32),
        'bo': (scale * jax.random.normal(ks[5], (1, n_classes))).astype(jnp.float32),
    }


def reference_forward(question_cls, text_rep, params):
    """Pure-JAX reference on the same bf16-rounded activations (for tolerance check)."""
    q = question_cls.astype(jnp.bfloat16).astype(jnp.float32)
    t = text_rep.astype(jnp.bfloat16).astype(jnp.float32)
    scores = jnp.einsum('bd,bsd->bs', q, t)
    p = jax.nn.softmax(scores, axis=-1)
    att = jnp.einsum('bs,bsd->bd', p, t)
    h1 = jax.nn.relu(att @ params['wq'] + params['bq'])
    h2 = jax.nn.relu(h1 @ params['wh'] + params['bh'])
    return h2 @ params['wo'] + params['bo']


if __name__ == "__main__":
    # Small shapes consistent with the module's forward:
    #   B=16 batch (so the grid actually iterates with b_tile=8), S=8 tokens,
    #   bert_dim=32, att_out=64, hidden=32, n_classes=2
    B, S, bert_dim = 16, 8, 32
    att_out_dim, hidden_dim, n_classes = 64, 32, 2

    key = jax.random.PRNGKey(0)
    k_q, k_t, k_p = jax.random.split(key, 3)

    question_cls = jax.random.normal(k_q, (B, bert_dim), dtype=jnp.float32)
    text_rep = jax.random.normal(k_t, (B, S, bert_dim), dtype=jnp.float32)
    params = init_params(k_p, bert_dim, att_out_dim, hidden_dim, n_classes)

    y = bert_rel_att_forward(question_cls, text_rep, params, b_tile=8)
    jax.block_until_ready(y['y_hat'])
    assert y['y_hat'].shape == (B, n_classes)

    ref = reference_forward(question_cls, text_rep, params)
    assert jnp.allclose(y['y_hat'], ref, rtol=1e-2, atol=1e-2), \
        f"max abs err = {float(jnp.max(jnp.abs(y['y_hat'] - ref)))}"

    print("KERNEL_OK")
</pallas_src>

<mosaic_0001>
module attributes {stable_mosaic.version = 11 : i64} {
  func.func @bert_rel_att_kernel(%arg0: i32, %arg1: memref<8x32xbf16, #tpu.memory_space<vmem>>, %arg2: memref<8x8x32xbf16, #tpu.memory_space<vmem>>, %arg3: memref<32x128xf32, #tpu.memory_space<vmem>>, %arg4: memref<1x128xf32, #tpu.memory_space<vmem>>, %arg5: memref<128x128xf32, #tpu.memory_space<vmem>>, %arg6: memref<1x128xf32, #tpu.memory_space<vmem>>, %arg7: memref<128x128xf32, #tpu.memory_space<vmem>>, %arg8: memref<1x128xf32, #tpu.memory_space<vmem>>, %arg9: memref<8x128xf32, #tpu.memory_space<vmem>>) attributes {dimension_semantics = [#tpu.dimension_semantics<parallel>], iteration_bounds = array<i64: 2>, scalar_prefetch = 0 : i64, scratch_operands = 0 : i64, tpu.core_type = #tpu.core_type<tc>, window_params = [{transform_indices = @transform_0, window_bounds = array<i64: 8, 32>}, {transform_indices = @transform_1, window_bounds = array<i64: 8, 8, 32>}, {pipeline_mode = #tpu.pipeline_mode<synchronous>, transform_indices = @transform_2, window_bounds = array<i64: 32, 128>}, {pipeline_mode = #tpu.pipeline_mode<synchronous>, transform_indices = @transform_3, window_bounds = array<i64: 1, 128>}, {pipeline_mode = #tpu.pipeline_mode<synchronous>, transform_indices = @transform_4, window_bounds = array<i64: 128, 128>}, {pipeline_mode = #tpu.pipeline_mode<synchronous>, transform_indices = @transform_5, window_bounds = array<i64: 1, 128>}, {pipeline_mode = #tpu.pipeline_mode<synchronous>, transform_indices = @transform_6, window_bounds = array<i64: 128, 128>}, {pipeline_mode = #tpu.pipeline_mode<synchronous>, transform_indices = @transform_7, window_bounds = array<i64: 1, 128>}, {transform_indices = @transform_8, window_bounds = array<i64: 8, 128>}]} {
    %c0 = arith.constant 0 : index
    %c0_0 = arith.constant 0 : index
    %0 = vector.load %arg1[%c0, %c0_0] : memref<8x32xbf16, #tpu.memory_space<vmem>>, vector<8x32xbf16>
    %1 = arith.extf %0 : vector<8x32xbf16> to vector<8x32xf32>
    %c0_1 = arith.constant 0 : index
    %c0_2 = arith.constant 0 : index
    %c0_3 = arith.constant 0 : index
    %2 = vector.load %arg2[%c0_1, %c0_2, %c0_3] : memref<8x8x32xbf16, #tpu.memory_space<vmem>>, vector<8x8x32xbf16>
    %3 = arith.extf %2 : vector<8x8x32xbf16> to vector<8x8x32xf32>
    %4 = vector.shape_cast %1 : vector<8x32xf32> to vector<8x1x32xf32>
    %5 = vector.broadcast %4 : vector<8x1x32xf32> to vector<8x8x32xf32>
    %6 = arith.mulf %5, %3 : vector<8x8x32xf32>
    %cst = arith.constant dense<0.000000e+00> : vector<8x8xf32>
    %7 = vector.multi_reduction <add>, %6, %cst [2] : vector<8x8x32xf32> to vector<8x8xf32>
    %cst_4 = arith.constant dense<0xFF800000> : vector<8xf32>
    %8 = vector.multi_reduction <maximumf>, %7, %cst_4 [1] : vector<8x8xf32> to vector<8xf32>
    %9 = vector.shape_cast %8 : vector<8xf32> to vector<8x1xf32>
    %10 = vector.broadcast %9 : vector<8x1xf32> to vector<8x8xf32>
    %11 = arith.subf %7, %10 : vector<8x8xf32>
    %12 = math.exp %11 : vector<8x8xf32>
    %cst_5 = arith.constant dense<0.000000e+00> : vector<8xf32>
    %13 = vector.multi_reduction <add>, %12, %cst_5 [1] : vector<8x8xf32> to vector<8xf32>
    %14 = vector.shape_cast %13 : vector<8xf32> to vector<8x1xf32>
    %15 = tpu.reciprocal %14 {approx = true} : vector<8x1xf32> -> vector<8x1xf32>
    %16 = vector.broadcast %15 : vector<8x1xf32> to vector<8x8xf32>
    %17 = arith.mulf %12, %16 : vector<8x8xf32>
    %18 = vector.shape_cast %17 : vector<8x8xf32> to vector<8x8x1xf32>
    %19 = vector.broadcast %18 : vector<8x8x1xf32> to vector<8x8x32xf32>
    %20 = arith.mulf %19, %3 : vector<8x8x32xf32>
    %cst_6 = arith.constant dense<0.000000e+00> : vector<8x32xf32>
    %21 = vector.multi_reduction <add>, %20, %cst_6 [1] : vector<8x8x32xf32> to vector<8x32xf32>
    %c0_7 = arith.constant 0 : index
    %c0_8 = arith.constant 0 : index
    %22 = vector.load %arg3[%c0_7, %c0_8] : memref<32x128xf32, #tpu.memory_space<vmem>>, vector<32x128xf32>
    %cst_9 = arith.constant dense<0.000000e+00> : vector<8x128xf32>
    %23 = tpu.matmul %21, %22, %cst_9 {dimension_numbers = #tpu.dot_dimension_numbers<[1], [0], [0], [1], [0, 0, 1, 1], [], []>} : vector<8x32xf32>, vector<32x128xf32>, vector<8x128xf32> -> vector<8x128xf32>
    %c0_10 = arith.constant 0 : index
    %c0_11 = arith.constant 0 : index
    %24 = vector.load %arg4[%c0_10, %c0_11] : memref<1x128xf32, #tpu.memory_space<vmem>>, vector<1x128xf32>
    %25 = vector.broadcast %24 : vector<1x128xf32> to vector<8x128xf32>
    %26 = arith.addf %23, %25 : vector<8x128xf32>
    %cst_12 = arith.constant 0.000000e+00 : f32
    %27 = vector.broadcast %cst_12 : f32 to vector<8x128xf32>
    %28 = arith.maximumf %26, %27 : vector<8x128xf32>
    %c0_13 = arith.constant 0 : index
    %c0_14 = arith.constant 0 : index
    %29 = vector.load %arg5[%c0_13, %c0_14] : memref<128x128xf32, #tpu.memory_space<vmem>>, vector<128x128xf32>
    %cst_15 = arith.constant dense<0.000000e+00> : vector<8x128xf32>
    %30 = tpu.matmul %28, %29, %cst_15 {dimension_numbers = #tpu.dot_dimension_numbers<[1], [0], [0], [1], [0, 0, 1, 1], [], []>} : vector<8x128xf32>, vector<128x128xf32>, vector<8x128xf32> -> vector<8x128xf32>
    %c0_16 = arith.constant 0 : index
    %c0_17 = arith.constant 0 : index
    %31 = vector.load %arg6[%c0_16, %c0_17] : memref<1x128xf32, #tpu.memory_space<vmem>>, vector<1x128xf32>
    %32 = vector.broadcast %31 : vector<1x128xf32> to vector<8x128xf32>
    %33 = arith.addf %30, %32 : vector<8x128xf32>
    %cst_18 = arith.constant 0.000000e+00 : f32
    %34 = vector.broadcast %cst_18 : f32 to vector<8x128xf32>
    %35 = arith.maximumf %33, %34 : vector<8x128xf32>
    %c0_19 = arith.constant 0 : index
    %c0_20 = arith.constant 0 : index
    %36 = vector.load %arg7[%c0_19, %c0_20] : memref<128x128xf32, #tpu.memory_space<vmem>>, vector<128x128xf32>
    %cst_21 = arith.constant dense<0.000000e+00> : vector<8x128xf32>
    %37 = tpu.matmul %35, %36, %cst_21 {dimension_numbers = #tpu.dot_dimension_numbers<[1], [0], [0], [1], [0, 0, 1, 1], [], []>} : vector<8x128xf32>, vector<128x128xf32>, vector<8x128xf32> -> vector<8x128xf32>
    %c0_22 = arith.constant 0 : index
    %c0_23 = arith.constant 0 : index
    %38 = vector.load %arg8[%c0_22, %c0_23] : memref<1x128xf32, #tpu.memory_space<vmem>>, vector<1x128xf32>
    %39 = vector.broadcast %38 : vector<1x128xf32> to vector<8x128xf32>
    %40 = arith.addf %37, %39 : vector<8x128xf32>
    %c0_24 = arith.constant 0 : index
    %c0_25 = arith.constant 0 : index
    %41 = vector.load %arg9[%c0_24, %c0_25] : memref<8x128xf32, #tpu.memory_space<vmem>>, vector<8x128xf32>
    tpu.vector_store %arg9[%c0_24, %c0_25], %40 {strides = array<i32>} : memref<8x128xf32, #tpu.memory_space<vmem>>, vector<8x128xf32>,
    return
  }
  func.func @transform_0(%arg0: i32) -> (i32, i32) {
    %c0_i32 = arith.constant 0 : i32
    %c0_i32_0 = arith.constant 0 : i32
    return %arg0, %c0_i32 : i32, i32
  }
  func.func @transform_1(%arg0: i32) -> (i32, i32, i32) {
    %c0_i32 = arith.constant 0 : i32
    %c0_i32_0 = arith.constant 0 : i32
    %c0_i32_1 = arith.constant 0 : i32
    return %arg0, %c0_i32, %c0_i32_0 : i32, i32, i32
  }
  func.func @transform_2(%arg0: i32) -> (i32, i32) {
    %c0_i32 = arith.constant 0 : i32
    %c0_i32_0 = arith.constant 0 : i32
    %c0_i32_1 = arith.constant 0 : i32
    return %c0_i32, %c0_i32_0 : i32, i32
  }
  func.func @transform_3(%arg0: i32) -> (i32, i32) {
    %c0_i32 = arith.constant 0 : i32
    %c0_i32_0 = arith.constant 0 : i32
    %c0_i32_1 = arith.constant 0 : i32
    return %c0_i32, %c0_i32_0 : i32, i32
  }
  func.func @transform_4(%arg0: i32) -> (i32, i32) {
    %c0_i32 = arith.constant 0 : i32
    %c0_i32_0 = arith.constant 0 : i32
    %c0_i32_1 = arith.constant 0 : i32
    return %c0_i32, %c0_i32_0 : i32, i32
  }
  func.func @transform_5(%arg0: i32) -> (i32, i32) {
    %c0_i32 = arith.constant 0 : i32
    %c0_i32_0 = arith.constant 0 : i32
    %c0_i32_1 = arith.constant 0 : i32
    return %c0_i32, %c0_i32_0 : i32, i32
  }
  func.func @transform_6(%arg0: i32) -> (i32, i32) {
    %c0_i32 = arith.constant 0 : i32
    %c0_i32_0 = arith.constant 0 : i32
    %c0_i32_1 = arith.constant 0 : i32
    return %c0_i32, %c0_i32_0 : i32, i32
  }
  func.func @transform_7(%arg0: i32) -> (i32, i32) {
    %c0_i32 = arith.constant 0 : i32
    %c0_i32_0 = arith.constant 0 : i32
    %c0_i32_1 = arith.constant 0 : i32
    return %c0_i32, %c0_i32_0 : i32, i32
  }
  func.func @transform_8(%arg0: i32) -> (i32, i32) {
    %c0_i32 = arith.constant 0 : i32
    %c0_i32_0 = arith.constant 0 : i32
    return %arg0, %c0_i32 : i32, i32
  }
}

</mosaic_0001>

<bundles_post_ra>
// kernel: tpu_custom_call.1
= control target key start
LH: loop header
LB: loop body
LE: loop exit
PB: predicated region body
PF: predicated region fallthrough
CT: control target
= control target key end

     0   :  { %s2710_s0 = inlined_call_operand.hbm [shape: bf16[16,32], index: 0, kind: input, shape index: {}]   ;;  %s2711_s1 = inlined_call_operand.hbm [shape: bf16[16,8,32], index: 1, kind: input, shape index: {}]   ;;  %s2712_s2 = inlined_call_operand.hbm [shape: f32[32,128], index: 2, kind: input, shape index: {}]   ;;  %s2713_s3 = inlined_call_operand.hbm [shape: f32[1,128], index: 3, kind: input, shape index: {}]   ;;  %s2714_s4 = inlined_call_operand.hbm [shape: f32[128,128], index: 4, kind: input, shape index: {}]   ;;  %s2715_s5 = inlined_call_operand.hbm [shape: f32[1,128], index: 5, kind: input, shape index: {}]   ;;  %s2716_s6 = inlined_call_operand.hbm [shape: f32[128,128], index: 6, kind: input, shape index: {}]   ;;  %s2717_s7 = inlined_call_operand.hbm [shape: f32[1,128], index: 7, kind: input, shape index: {}]   ;;  %s2718_s8 = inlined_call_operand.hbm [shape: f32[16,128], index: 8, kind: output, shape index: {}]  }
   0x1   :  { %2724 = sst [smem:[#allocation24_spill]] %s2710_s0 }
   0x2   :  { %2725 = sst [smem:[#allocation25_spill]] %s2712_s2 }
   0x3   :  { %2726 = sst [smem:[#allocation26_spill]] %s2713_s3 }
   0x4   :  { %2727 = sst [smem:[#allocation27_spill]] %s2714_s4 }
   0x5   :  { %13 = vsyncpa [#allocation3], 0 }
   0x6   :  { %15 = vsyncpa [#allocation3 + $0x1], 0 }
   0x7   :  { %16 = vsyncpa [#allocation6], 0 }
   0x8   :  { %18 = vsyncpa [#allocation6 + $0x1], 0 }
   0x9   :  { %19 = vsyncpa [#allocation9], 0 }
   0xa   :  { %20 = vsyncpa [#allocation12], 0 }
   0xb   :  { %21 = vsyncpa [#allocation15], 0 }
   0xc   :  { %22 = vsyncpa [#allocation4], 0 }
   0xd   :  { %24 = vsyncpa [#allocation4 + $0x1], 0  ;;  %s2136_s27 = smov 0   ;;  %s2138_s28 = smov 0  }
   0xe   :  { %s2140_s29 = smov 0   ;;  %s2142_s30 = smov 0  }
   0xf LB: > { %s2073_s9 = smov [#allocation7]   ;;  %s2157_s11 = sadd.s32 4294967295, %s2071_s30   ;;  %s2071_s30 = sphi %s2142_s30, %s2758_s30   ;;  %s2067_s29 = sphi %s2140_s29, %s2757_s29   ;;  %s2063_s28 = sphi %s2138_s28, %s2756_s28   ;;  %s2059_s27 = sphi %s2136_s27, %s2755_s27  }
  0x10   : > { %s251_s10 = sshll.u32 %s2073_s9, 4  ;;  %p1391_p0 = scmp.ge.s32.totalorder %s2071_s30, 1  ;;  %s2162_s10 = int_to_ptr.vmem [resolvable:$true] %s251_s10 }
  0x11   : > { %p2721_p1 = scmp.eq.s32.totalorder %s2157_s11, 0  ;;  %p239_p2 = scmp.lt.s32.totalorder %s2071_s30, 3 }
  0x12   : > { %s2074_s13 = smov [#allocation8]   ;;  %s2075_s16 = smov [#allocation11]  }
  0x13   : > { %p2164_p3 = pnand %p1391_p0, %p239_p2  ;;  %s265_s14 = sshll.u32 %s2074_s13, 4  ;;  %s2177_s14 = int_to_ptr.vmem [resolvable:$true] %s265_s14 }
  0x14   : > { %s289_s17 = sshll.u32 %s2075_s16, 4  ;;  %s2730_s2 = sld [smem:[#allocation25_spill]]  ;;  %s2179_s17 = int_to_ptr.vmem [resolvable:$true] %s289_s17 }
  0x15   : > { %s2728_s12 = scalar_select %p2164_p3, 1, 0 }
  0x16   : > { %p1646_p5 = pneg %p2164_p3 }
  0x18   : > { %p2173_p6 = pnand %p1646_p5, %p2721_p1 }
  0x1a   : > { %s1757_s20 = scalar_lea.hbm %s2730_s2, 512  ;;  %p2189_p8 = pneg %p2173_p6 }
  0x1b   : > { %p1758_p7 = scmp.ne.s32.totalorder %s2730_s2, %s1757_s20  ;;  %p1764_p11 = scmp.lt.u32.totalorder %s1757_s20, %s2730_s2 }
  0x1d   : > { %p1760_p9 = pnand %p2189_p8, %p1758_p7 }
  0x1f   : > { %p1761_p10 = pneg %p1760_p9 }
  0x21   : > { %p1766_p12 = pnand %p1764_p11, %p1761_p10 }
  0x23   : > { %1769 = shalt.err (!%p1766_p12)
}
  0x24   : > { %s1770_s26 = scalar_lea.vmem %s2162_s10, 512  ;;  %p1778_p5 = scmp.lt.s32.totalorder %s2162_s10, %s2162_s10 }
  0x25   : > { %p1771_p13 = scmp.ne.s32.totalorder %s2162_s10, %s1770_s26  ;;  %p1779_p4 = scmp.lt.s32.totalorder %s1770_s26, %s1770_s26 }
  0x27   : > { %p1773_p0 = pnand %p1771_p13, %p2189_p8  ;;  %p1780_p7 = por %p1779_p4, %p1778_p5 }
  0x29   : > { %p1774_p2 = pneg %p1773_p0 }
  0x2b   : > { %p1781_p9 = pnand %p1780_p7, %p1774_p2 }
  0x2d   : > { %1784 = shalt.err (!%p1781_p9)
}
  0x2e   : > { %s2719_s9 = smov 128   ;;  %s2077_s13 = smov 8  }
  0x2f   : > { %1649 = dma.hbm_to_vmem [thread:$0]  (!%p2173_p6), %s2730_s2, 512, %s2162_s10, [#allocation6], %s2719_s9, %s2719_s9, %s2077_s13  }
  0x30   : > { %s2732_s3 = sld [smem:[#allocation26_spill]] }
  0x36   : > { %s1785_s21 = scalar_lea.hbm %s2732_s3, 16 }
  0x37   : > { %p1786_p4 = scmp.ne.s32.totalorder %s2732_s3, %s1785_s21  ;;  %p1792_p12 = scmp.lt.u32.totalorder %s1785_s21, %s2732_s3 }
  0x39   : > { %p1788_p10 = pnand %p1786_p4, %p2189_p8 }
  0x3b   : > { %p1789_p11 = pneg %p1788_p10 }
  0x3d   : > { %p1794_p13 = pnand %p1792_p12, %p1789_p11 }
  0x3f   : > { %1797 = shalt.err (!%p1794_p13)
}
  0x40   : > { %s1798_s10 = scalar_lea.vmem %s2177_s14, 16  ;;  %s1805_s16 = scalar_lea.vmem %s2177_s14, 32 }
  0x41   : > { %p1799_p0 = scmp.ne.s32.totalorder %s2177_s14, %s1798_s10  ;;  %p1806_p7 = scmp.lt.s32.totalorder %s2177_s14, %s2177_s14 }
  0x42   : > { %p1807_p9 = scmp.lt.s32.totalorder %s1805_s16, %s1798_s10 }
  0x43   : > { %p1801_p2 = pnand %p1799_p0, %p2189_p8 }
  0x44   : > { %p1808_p4 = por %p1807_p9, %p1806_p7 }
  0x45   : > { %p1802_p5 = pneg %p1801_p2 }
  0x47   : > { %p1809_p10 = pnand %p1808_p4, %p1802_p5 }
  0x49   : > { %1812 = shalt.err (!%p1809_p10)
}
  0x4a   : > { %1652 = dma.hbm_to_vmem [thread:$0]  (!%p2173_p6), %s2732_s3, 16, %s2177_s14, [#allocation9]  }
  0x4b   : > { %s1813_s22 = scalar_lea.hbm %s2715_s5, 16 }
  0x4c   : > { %p1814_p11 = scmp.ne.s32.totalorder %s2715_s5, %s1813_s22  ;;  %p1820_p0 = scmp.lt.u32.totalorder %s1813_s22, %s2715_s5 }
  0x4e   : > { %p1816_p12 = pnand %p1814_p11, %p2189_p8 }
  0x50   : > { %p1817_p13 = pneg %p1816_p12 }
  0x52   : > { %p1822_p2 = pnand %p1820_p0, %p1817_p13 }
  0x54   : > { %1825 = shalt.err (!%p1822_p2)
}
  0x55   : > { %s1826_s14 = scalar_lea.vmem %s2179_s17, 16  ;;  %s1833_s16 = scalar_lea.vmem %s2179_s17, 32 }
  0x56   : > { %p1827_p5 = scmp.ne.s32.totalorder %s2179_s17, %s1826_s14  ;;  %p1834_p4 = scmp.lt.s32.totalorder %s2179_s17, %s2179_s17 }
  0x57   : > { %p1835_p10 = scmp.lt.s32.totalorder %s1833_s16, %s1826_s14 }
  0x58   : > { %p1829_p7 = pnand %p1827_p5, %p2189_p8 }
  0x59   : > { %p1836_p11 = por %p1835_p10, %p1834_p4 }
  0x5a   : > { %p1830_p9 = pneg %p1829_p7 }
  0x5c   : > { %p1837_p12 = pnand %p1836_p11, %p1830_p9 }
  0x5e   : > { %1840 = shalt.err (!%p1837_p12)
}
  0x5f   : > { %1658 = dma.hbm_to_vmem [thread:$0]  (!%p2173_p6), %s2715_s5, 16, %s2179_s17, [#allocation12]  }
  0x60   : > { %s2078_s20 = smov [#allocation10]   ;;  %s2079_s22 = smov [#allocation13]  }
  0x61   : > { %s275_s21 = sshll.u32 %s2078_s20, 4  ;;  %s299_s24 = sshll.u32 %s2079_s22, 4  ;;  %s276_s21 = int_to_ptr.vmem [resolvable:$true] %s275_s21  ;;  %s300_s24 = int_to_ptr.vmem [resolvable:$true] %s299_s24 }
  0x62   : > { %s2733_s4 = sld [smem:[#allocation27_spill]] }
  0x68   : > { %s1841_s10 = scalar_lea.hbm %s2733_s4, 2048 }
  0x69   : > { %p1842_p13 = scmp.ne.s32.totalorder %s2733_s4, %s1841_s10  ;;  %p1848_p5 = scmp.lt.u32.totalorder %s1841_s10, %s2733_s4 }
  0x6b   : > { %p1844_p0 = pnand %p1842_p13, %p2189_p8 }
  0x6d   : > { %p1845_p2 = pneg %p1844_p0 }
  0x6f   : > { %p1850_p7 = pnand %p1848_p5, %p1845_p2 }
  0x71   : > { %1853 = shalt.err (!%p1850_p7)
}
  0x72   : > { %s1854_s17 = scalar_lea.vmem %s276_s21, 2048  ;;  %p1862_p11 = scmp.lt.s32.totalorder %s276_s21, %s276_s21 }
  0x73   : > { %p1855_p9 = scmp.ne.s32.totalorder %s276_s21, %s1854_s17  ;;  %p1863_p12 = scmp.lt.s32.totalorder %s1854_s17, %s1854_s17 }
  0x75   : > { %p1857_p4 = pnand %p1855_p9, %p2189_p8  ;;  %p1864_p1 = por %p1863_p12, %p1862_p11 }
  0x77   : > { %p1858_p10 = pneg %p1857_p4 }
  0x79   : > { %p1865_p3 = pnand %p1864_p1, %p1858_p10 }
  0x7b   : > { %1868 = shalt.err (!%p1865_p3)
}
  0x7c   : > { %s2734_s19 = smov 128   ;;  %s1869_s26 = scalar_lea.hbm %s2716_s6, 2048 }
  0x7d   : > { %1655 = dma.hbm_to_vmem [thread:$0]  (!%p2173_p6), %s2733_s4, 2048, %s276_s21, [#allocation9], %s2734_s19, %s2734_s19, %s2077_s13  }
  0x7e   : > { %p1870_p1 = scmp.ne.s32.totalorder %s2716_s6, %s1869_s26  ;;  %p1876_p0 = scmp.lt.u32.totalorder %s1869_s26, %s2716_s6 }
  0x80   : > { %p1872_p3 = pnand %p1870_p1, %p2189_p8 }
  0x82   : > { %p1873_p13 = pneg %p1872_p3 }
  0x84   : > { %p1878_p2 = pnand %p1876_p0, %p1873_p13 }
  0x86   : > { %1881 = shalt.err (!%p1878_p2)
}
  0x87   : > { %s1882_s17 = scalar_lea.vmem %s300_s24, 2048  ;;  %p1890_p4 = scmp.lt.s32.totalorder %s300_s24, %s300_s24 }
  0x88   : > { %p1883_p5 = scmp.ne.s32.totalorder %s300_s24, %s1882_s17  ;;  %p1891_p10 = scmp.lt.s32.totalorder %s1882_s17, %s1882_s17 }
  0x8a   : > { %p1885_p7 = pnand %p1883_p5, %p2189_p8  ;;  %p1892_p11 = por %p1891_p10, %p1890_p4 }
  0x8c   : > { %p1886_p9 = pneg %p1885_p7 }
  0x8e   : > { %p1893_p12 = pnand %p1892_p11, %p1886_p9 }
  0x90   : > { %1896 = shalt.err (!%p1893_p12)
}
  0x91   : > { %1661 = dma.hbm_to_vmem [thread:$0]  (!%p2173_p6), %s2716_s6, 2048, %s300_s24, [#allocation12], %s2734_s19, %s2734_s19, %s2077_s13  }
  0x92   : > { %s2080_s20 = smov [#allocation14]   ;;  %s1897_s10 = scalar_lea.hbm %s2717_s7, 16 }
  0x93   : > { %s313_s22 = sshll.u32 %s2080_s20, 4  ;;  %p1898_p1 = scmp.ne.s32.totalorder %s2717_s7, %s1897_s10  ;;  %s314_s22 = int_to_ptr.vmem [resolvable:$true] %s313_s22 }
  0x94   : > { %p1904_p0 = scmp.lt.u32.totalorder %s1897_s10, %s2717_s7 }
  0x95   : > { %p1900_p3 = pnand %p1898_p1, %p2189_p8 }
  0x97   : > { %p1901_p13 = pneg %p1900_p3 }
  0x99   : > { %p1906_p2 = pnand %p1904_p0, %p1901_p13 }
  0x9b   : > { %1909 = shalt.err (!%p1906_p2)
}
  0x9c   : > { %s1910_s13 = scalar_lea.vmem %s314_s22, 16  ;;  %s1917_s24 = scalar_lea.vmem %s314_s22, 32 }
  0x9d   : > { %p1911_p5 = scmp.ne.s32.totalorder %s314_s22, %s1910_s13  ;;  %p1918_p4 = scmp.lt.s32.totalorder %s314_s22, %s314_s22 }
  0x9e   : > { %p1919_p10 = scmp.lt.s32.totalorder %s1917_s24, %s1910_s13 }
  0x9f   : > { %p1913_p7 = pnand %p1911_p5, %p2189_p8 }
  0xa0   : > { %p1920_p11 = por %p1919_p10, %p1918_p4 }
  0xa1   : > { %p1914_p9 = pneg %p1913_p7 }
  0xa3   : > { %p1921_p12 = pnand %p1920_p11, %p1914_p9 }
  0xa5   : > { %1924 = shalt.err (!%p1921_p12)
}
  0xa6   : > { %1664 = dma.hbm_to_vmem [thread:$0]  (!%p2173_p6), %s2717_s7, 16, %s314_s22, [#allocation15]  }
  0xa7   : > { %s1390_s23 = sadd.s32 4294967294, %s2071_s30   ;;  %s2323_s15 = sadd.s32 1, %s2071_s30  }
  0xa8   : > { %s34_s9 = ssub.s32 %s2071_s30, %s2323_s15  ;;  %s37_s20 = sadd.s32 1, %s2067_s29 }
  0xa9   : > { %p35_p8 = scmp.eq.s32.totalorder %s34_s9, 0  ;;  %p44_p1 = scmp.ne.s32.totalorder %s2067_s29, %s2063_s28 }
  0xaa   : > { %p45_p3 = scmp.eq.s32.totalorder %s2071_s30, 0  ;;  %p50_p13 = scmp.ne.s32.totalorder %s2063_s28, %s2059_s27 }
  0xab   : > { %s2334_s25 = scalar_select %p35_p8, %s2067_s29, %s37_s20  }
  0xac   : > { %p2336_p0 = por %p45_p3, %p44_p1  ;;  %p2736_p2 = scmp.eq.s32.totalorder %s2157_s11, 0 }
  0xad   : > { %p226_p5 = scmp.eq.s32.totalorder %s2157_s11, 1  ;;  %p232_p7 = scmp.eq.s32.totalorder %s1390_s23, 1 }
  0xae   : > { %p2342_p6 = por %p2736_p2, %p50_p13  ;;  %p1682_p9 = scmp.lt.s32.totalorder %s2071_s30, 2 }
  0xaf   : > { %s2349_s10 = sand.u32 1, %s2067_s29   ;;  %p2351_p4 = por %p226_p5, %p44_p1 }
  0xb0   : > { %p2355_p10 = por %p232_p7, %p50_p13  ;;  %s1399_s18 = sshll.u32 %s2349_s10, 2 }
  0xb1   : > { %s2738_s14 = scalar_select %p2351_p4, 1, 0 }
  0xb2   : > { %s2739_s16 = scalar_select %p2355_p10, 1, 0 }
  0xb3   : > { %s1400_s17 = sshll.u32 %s2071_s30, 6  ;;  %s2740_s0 = sld [smem:[#allocation24_spill]] }
  0xb4   : > { %s328_s21 = scalar_lea.vmem [#allocation2], %s1399_s18  ;;  %p2370_p11 = pnand %p1682_p9, %p2336_p0 }
  0xb5   : > { %s335_s23 = sshll.u32 %s328_s21, 4  ;;  %s1401_s20 = sshll.u32 %s2349_s10, 5  ;;  %s2366_s23 = int_to_ptr.vmem [resolvable:$true] %s335_s23 }
  0xb6   : > { %s325_s13 = scalar_lea.sflag [#allocation3], %s2349_s10  ;;  %p1927_p8 = pneg %p2370_p11 }
  0xb9   : > { %s2364_s19 = scalar_lea.hbm %s2740_s0, %s1400_s17  ;;  %s1930_s26 = scalar_lea.hbm %s2740_s0, 128 }
  0xba   : > { %s1925_s17 = scalar_lea.hbm %s2364_s19, 64  ;;  %p1931_p13 = scmp.lt.u32.totalorder %s2364_s19, %s2740_s0 }
  0xbb   : > { %p1926_p12 = scmp.ne.s32.totalorder %s2364_s19, %s1925_s17  ;;  %p1932_p0 = scmp.lt.u32.totalorder %s1930_s26, %s1925_s17 }
  0xbc   : > { %p1934_p5 = scmp.lt.u32.totalorder %s1925_s17, %s2364_s19 }
  0xbd   : > { %p1928_p1 = pnand %p1927_p8, %p1926_p12  ;;  %p1933_p2 = por %p1932_p0, %p1931_p13 }
  0xbf   : > { %p1929_p3 = pneg %p1928_p1  ;;  %p1935_p7 = por %p1934_p5, %p1933_p2 }
  0xc1   : > { %p1936_p9 = pnand %p1935_p7, %p1929_p3 }
  0xc3   : > { %1939 = shalt.err (!%p1936_p9)
}
  0xc4   : > { %s1940_s2 = scalar_lea.vmem %s2366_s23, 64  ;;  %s2081_s18 = smov [#allocation2]  }
  0xc5   : > { %p1941_p12 = scmp.ne.s32.totalorder %s2366_s23, %s1940_s2  ;;  %s1945_s24 = sshll.u32 %s2081_s18, 4  ;;  %s1946_s24 = int_to_ptr.vmem [resolvable:$false] %s1945_s24 }
  0xc6   : > { %s1947_s3 = scalar_lea.vmem %s1946_s24, 128  ;;  %p1948_p4 = scmp.lt.s32.totalorder %s2366_s23, %s1946_s24 }
  0xc7   : > { %p1943_p1 = pnand %p1941_p12, %p1927_p8  ;;  %p1949_p13 = scmp.lt.s32.totalorder %s1947_s3, %s1940_s2 }
  0xc9   : > { %p1944_p10 = pneg %p1943_p1  ;;  %p1950_p0 = por %p1949_p13, %p1948_p4 }
  0xcb   : > { %p1951_p2 = pnand %p1950_p0, %p1944_p10 }
  0xcd   : > { %1954 = shalt.err (!%p1951_p2)
}
  0xce   : > { %1668 = dma.hbm_to_vmem [thread:$0]  (!%p2370_p11), %s2364_s19, 64, %s2366_s23, %s325_s13  }
  0xcf   : > { %s346_s17 = scalar_lea.vmem [#allocation5], %s1401_s20  ;;  %s1422_s21 = sshll.u32 %s2071_s30, 9 }
  0xd0   : > { %s353_s26 = sshll.u32 %s346_s17, 4  ;;  %s2410_s24 = scalar_lea.hbm %s2711_s1, %s1422_s21  ;;  %s2404_s26 = int_to_ptr.vmem [resolvable:$true] %s353_s26 }
  0xd1   : > { %s2742_s3 = sand.u32 1, %s2071_s30   ;;  %s1955_s4 = scalar_lea.hbm %s2410_s24, 512 }
  0xd2   : > { %s2414_s0 = scalar_lea.sflag [#allocation6], %s2742_s3  ;;  %p1956_p4 = scmp.ne.s32.totalorder %s2410_s24, %s1955_s4 }
  0xd3   : > { %s1960_s23 = scalar_lea.hbm %s2711_s1, 1024  ;;  %p1961_p5 = scmp.lt.u32.totalorder %s2410_s24, %s2711_s1 }
  0xd4   : > { %p1958_p10 = pnand %p1956_p4, %p1927_p8  ;;  %p1962_p7 = scmp.lt.u32.totalorder %s1960_s23, %s1955_s4 }
  0xd5   : > { %p1964_p12 = scmp.lt.u32.totalorder %s1955_s4, %s2410_s24 }
  0xd6   : > { %p1959_p3 = pneg %p1958_p10  ;;  %p1963_p9 = por %p1962_p7, %p1961_p5 }
  0xd8   : > { %p1965_p1 = por %p1964_p12, %p1963_p9 }
  0xda   : > { %p1966_p13 = pnand %p1965_p1, %p1959_p3 }
  0xdc   : > { %1969 = shalt.err (!%p1966_p13)
}
  0xdd   : > { %s1970_s17 = scalar_lea.vmem %s2404_s26, 512  ;;  %s2082_s21 = smov [#allocation5]  }
  0xde   : > { %p1971_p0 = scmp.ne.s32.totalorder %s2404_s26, %s1970_s17  ;;  %s1975_s18 = sshll.u32 %s2082_s21, 4  ;;  %s1976_s18 = int_to_ptr.vmem [resolvable:$false] %s1975_s18 }
  0xdf   : > { %s1977_s2 = scalar_lea.vmem %s1976_s18, 1024  ;;  %p1978_p10 = scmp.lt.s32.totalorder %s2404_s26, %s1976_s18 }
  0xe0   : > { %p1973_p2 = pnand %p1971_p0, %p1927_p8  ;;  %p1979_p5 = scmp.lt.s32.totalorder %s1977_s2, %s1970_s17 }
  0xe2   : > { %p1974_p4 = pneg %p1973_p2  ;;  %p1980_p7 = por %p1979_p5, %p1978_p10 }
  0xe4   : > { %p1981_p9 = pnand %p1980_p7, %p1974_p4 }
  0xe6   : > { %1984 = shalt.err (!%p1981_p9)
}
  0xe7   : > { %s2083_s4 = smov 64   ;;  %s2084_s3 = smov 4  }
  0xe8   : > { %1671 = dma.hbm_to_vmem [thread:$0]  (!%p2370_p11), %s2410_s24, 512, %s2404_s26, %s2414_s0, %s2083_s4, %s2083_s4, %s2084_s3  }
  0xe9   : > { %p2743_p8 = scmp.ne.s32.totalorder %s2728_s12, 0 }
  0xea   : > { %s2443_s10 = sand.u32 (!%p2743_p8), 1, %s2063_s28  }
  0xeb   : > { %365 = sbr.rel (%p2743_p8) target bundleno = 1739 (0x6cb), region = 52  ;;  %s1405_s19 = sshll.u32 (!%p2743_p8), %s2443_s10, 2 }
  0xec   : > { %s368_s23 = scalar_lea.sflag (!%p2743_p8), [#allocation3], %s2443_s10  ;;  %s371_s20 = scalar_lea.vmem (!%p2743_p8), [#allocation2], %s1405_s19 }
  0xf2   : > { %2030 = dma.done.wait (%p2342_p6), %s368_s23, 64  }
  0xf3   : > { %2032 = vsyncadd (%p2342_p6), %s368_s23, 4294967232  ;;  %s376_s0 = sand.u32 1, %s2157_s11   ;;  %s1406_s12 = sshll.u32 %s2443_s10, 5 }
  0xf4   : > { %s377_s9 = scalar_lea.sflag [#allocation6], %s376_s0  ;;  %s2453_s26 = scalar_lea.vmem [#allocation5], %s1406_s12 }
  0xf5   : > { %2034 = dma.done.wait (%p2342_p6), %s377_s9, 512  }
  0xf6   : > { %2036 = vsyncadd (%p2342_p6), %s377_s9, 4294966784  ;;  %p2744_p11 = scmp.eq.s32.totalorder %s2157_s11, 0 }
  0xf8   : > { %2038 = dma.done.wait (%p2744_p11), [#allocation6], 512   ;;  %p2745_p3 = pmov %p2744_p11 }
  0xfa   : > { %2040 = vsyncadd (%p2745_p3), [#allocation6], 4294966784  ;;  %p2746_p12 = pmov %p2745_p3 }
  0xfb   : > { %p2747_p1 = pmov %p2745_p3 }
  0xfc   : > { %2042 = dma.done.wait (%p2746_p12), [#allocation9], 2064  }
  0xfd   : > { %2044 = vsyncadd (%p2747_p1), [#allocation9], 4294965232  ;;  %p2748_p13 = pmov %p2747_p1 }
  0xfe   : > { %p2749_p0 = pmov %p2747_p1 }
  0xff   : > { %2046 = dma.done.wait (%p2748_p13), [#allocation12], 2064  }
 0x100   : > { %2048 = vsyncadd (%p2749_p0), [#allocation12], 4294965232  ;;  %p2750_p6 = pmov %p2749_p0 }
 0x101   : > { %p2751_p2 = pmov %p2749_p0 }
 0x102   : > { %2050 = dma.done.wait (%p2750_p6), [#allocation15], 16  }
 0x103   : > { %2052 = vsyncadd (%p2751_p2), [#allocation15], 4294967280  ;;  %v466_v0 = vlaneseq  ;;  %v2085_v1 = vmov 1966171168   ;;  %v443_v8 = vld [vmem:[%s371_s20] sm:$0xf] }
 0x104   : > { %v464_v2 = vunpack.c.l.s4 %v2085_v1  ;;  %v444_v9 = vunpack.c.l.bf16 %v443_v8  ;;  %v2482_v10 = vld [vmem:[%s2453_s26] sm:$0xff]   ;;  %v2488_v13 = vld [vmem:[%s2453_s26 + $0x8] sm:$0xff]   ;;  %v2492_v18 = vld [vmem:[%s2453_s26 + $0x10] sm:$0xff]   ;;  %vm559_vm0 = vcmask 261120   ;;  %vm626_vm1 = vcmask 1041409   ;;  %s1413_s22 = sshll.u32 %s2443_s10, 3 }
 0x105   : > { %v2475_v3 = vshrl.u32 %v466_v0, 7  ;;  %v593_v4 = vand.u32 127, %v466_v0  ;;  %v1425_v15 = vunpack.c.l.bf16 %v2482_v10  ;;  %v1429_v20 = vunpack.c.l.bf16 %v2488_v13  ;;  %v2504_v33 = vld [vmem:[%s2453_s26 + $0x18] sm:$0xff]   ;;  %s1419_s24 = sshll.u32 %s2157_s11, 7  ;;  %s441_s13 = scalar_lea.vmem [#allocation16], %s1413_s22 }
 0x106   : > { %v465_v5 = vunpack.c.0.s8 %v464_v2  ;;  %v462_v14 = vcombine.high %v444_v9, %v444_v9  ;;  %v1426_v21 = vunpack.c.h.bf16 %v2482_v10  ;;  %v1430_v26 = vunpack.c.h.bf16 %v2488_v13  ;;  %s1240_s17 = sshll.u32 %s441_s13, 4  ;;  %s2666_s2 = scalar_lea.hbm %s2718_s8, %s1419_s24  ;;  %s2668_s17 = int_to_ptr.vmem [resolvable:$true] %s1240_s17 }
 0x107   : > { %v2478_v6 = vsub.s32 %v593_v4, %v2475_v3  ;;  %v2485_v12 = vsub.s32 0, %v2475_v3  ;;  %v1433_v27 = vunpack.c.l.bf16 %v2492_v18  ;;  %v1434_v35 = vunpack.c.h.bf16 %v2492_v18  ;;  %s1227_s4 = scalar_lea.sflag [#allocation4], %s2443_s10  ;;  %s1985_s3 = scalar_lea.vmem %s2668_s17, 128 }
 0x108   : > { %v468_v7 = vsub.s32 %v465_v5, %v2475_v3  ;;  %v1437_v44 = vunpack.c.l.bf16 %v2504_v33  ;;  %v1438_v52 = vunpack.c.h.bf16 %v2504_v33  ;;  %vm628_vm2 = vcmask 1042434   ;;  %p1986_p4 = scmp.ne.s32.totalorder %s2668_s17, %s1985_s3  ;;  %p2752_p10 = scmp.ne.s32.totalorder %s2738_s14, 0 }
 0x109   : > { %vm630_vm3 = vcmask 1043459   ;;  %vm632_vm4 = vcmask 1044484   ;;  %vm634_vm5 = vcmask 1045509   ;;  %vm636_vm6 = vcmask 1046534   ;;  %s2090_s11 = smov [#allocation16]  }
 0x10a   : > { %v469_v11 = vrot.slane %v444_v9, %v468_v7  ;;  %v476_v19 = vrot.slane %v462_v14, %v468_v7  ;;  %vm638_vm7 = vcmask 1047559   ;;  %vm641_vm8 = vcmask 64512   ;;  %p1987_p5 = pnand %p1986_p4, %p2752_p10  ;;  %s1989_s19 = sshll.u32 %s2090_s11, 4  ;;  %s1990_s19 = int_to_ptr.vmem [resolvable:$false] %s1989_s19 }
 0x10b   : > { %vm2088_vm9 = vmmov 0   ;;  %s1991_s23 = scalar_lea.vmem %s1990_s19, 256  ;;  %p1992_p9 = scmp.lt.s32.totalorder %s2668_s17, %s1990_s19 }
 0x10c   : > { %v485_v16 = vrot.slane %v469_v11, %v468_v7  ;;  %v477_v17 = vcombine.high %v469_v11, %v469_v11  ;;  %v492_v25 = vrot.slane %v476_v19, %v468_v7  ;;  %v478_v28 = vcombine.high %v476_v19, %v476_v19  ;;  %p1988_p7 = pneg %p1987_p5  ;;  %p1993_p8 = scmp.lt.s32.totalorder %s1991_s23, %s1985_s3 }
 0x10e   : > { %v514_v22 = vrot.slane %v485_v16, %v2485_v12  ;;  %v507_v23 = vcombine.high %v485_v16, %v485_v16  ;;  %v499_v24 = vrot.slane %v477_v17, %v468_v7  ;;  %v530_v34 = vrot.slane %v492_v25, %v2485_v12  ;;  %p1994_p11 = por %p1993_p8, %p1992_p9 }
 0x10f   : > { %v506_v36 = vrot.slane %v478_v28, %v468_v7  ;;  %v508_v37 = vcombine.high %v492_v25, %v492_v25 }
 0x110   : > { %v551_v29 = vmul.f32 %v1425_v15, %v514_v22  ;;  %v522_v30 = vrot.slane %v507_v23, %v2485_v12  ;;  %v518_v31 = vrot.slane %v499_v24, %v2485_v12  ;;  %v509_v32 = vcombine.high %v499_v24, %v499_v24  ;;  %p1995_p3 = pnand %p1994_p11, %p1988_p7 }
 0x111   : > { %v555_v42 = vmul.f32 %v1433_v27, %v530_v34  ;;  %v534_v43 = vrot.slane %v506_v36, %v2485_v12  ;;  %v510_v45 = vcombine.high %v506_v36, %v506_v36  ;;  %v538_v49 = vrot.slane %v508_v37, %v2485_v12 }
 0x112   : > { %v560_v38 = vsel %vm559_vm0, %v551_v29, 0.0  ;;  %v553_v39 = vmul.f32 %v1429_v20, %v522_v30  ;;  %v552_v40 = vmul.f32 %v1426_v21, %v518_v31  ;;  %v526_v41 = vrot.slane %v509_v32, %v2485_v12 }
 0x113   : > { %561 = vadd.xlane.f32.xlu0 %v560_v38  ;;  %v556_v51 = vmul.f32 %v1434_v35, %v534_v43  ;;  %v542_v53 = vrot.slane %v510_v45, %v2485_v12  ;;  %v572_v54 = vsel %vm559_vm0, %v555_v42, 0.0  ;;  %v557_v55 = vmul.f32 %v1437_v44, %v538_v49 }
 0x114   : > { %v566_v46 = vsel %vm559_vm0, %v553_v39, 0.0  ;;  %v563_v47 = vsel %vm559_vm0, %v552_v40, 0.0  ;;  %v554_v48 = vmul.f32 %v1430_v26, %v526_v41  ;;  %v2086_v31 = vmov 0  }
 0x115   : > { %567 = vadd.xlane.f32.xlu1 %v566_v46  ;;  %v575_v56 = vsel %vm559_vm0, %v556_v51, 0.0  ;;  %v558_v57 = vmul.f32 %v1438_v52, %v542_v53  ;;  %v578_v58 = vsel %vm559_vm0, %v557_v55, 0.0  ;;  %1738 = vset.pattern.permute.xlu0 %v2086_v31  ;;  %v652_v32 = vsub.s32 1, %v2475_v3 }
 0x116   : > { %v569_v50 = vsel %vm559_vm0, %v554_v48, 0.0  ;;  %1737 = vset.pattern.permute.xlu1 %v2086_v31  ;;  %v656_v34 = vsub.s32 2, %v2475_v3  ;;  %v660_v36 = vsub.s32 3, %v2475_v3  ;;  %v664_v41 = vsub.s32 4, %v2475_v3 }
 0x117   : > { %564 = vadd.xlane.f32.xlu0 %v563_v47  ;;  %v581_v59 = vsel %vm559_vm0, %v558_v57, 0.0  ;;  %v668_v49 = vsub.s32 5, %v2475_v3 }
 0x119   : > { %570 = vadd.xlane.f32.xlu1 %v569_v50 }
 0x11b   : > { %573 = vadd.xlane.f32.xlu0 %v572_v54  ;;  %v672_v54 = vsub.s32 6, %v2475_v3 }
 0x11d   : > { %576 = vadd.xlane.f32.xlu1 %v575_v56 }
 0x11f   : > { %579 = vadd.xlane.f32.xlu0 %v578_v58  ;;  %v676_v58 = vsub.s32 7, %v2475_v3 }
 0x121   : > { %582 = vadd.xlane.f32.xlu1 %v581_v59 }
 0x1a0   : > { %v562_v60 = vpop.xlane.xlu0 %561 }
 0x1a1   : > { %v597_v63 = vrot.slane %v562_v60, %v2478_v6 }
 0x1a2   : > { %v568_v61 = vpop.xlane.xlu1 %567 }
 0x1a3   : > { %v605_v1 = vrot.slane %v568_v61, %v2478_v6 }
 0x1a4   : > { %v565_v62 = vpop.xlane.xlu0 %564 }
 0x1a5   : > { %v601_v0 = vrot.slane %v565_v62, %v2478_v6 }
 0x1a6   : > { %v571_v2 = vpop.xlane.xlu1 %570 }
 0x1a7   : > { %v627_v4 = vsel %vm626_vm1, %v601_v0, %v597_v63  ;;  %v609_v5 = vrot.slane %v571_v2, %v2478_v6 }
 0x1a8   : > { %v629_v7 = vsel %vm628_vm2, %v605_v1, %v627_v4  ;;  %v574_v8 = vpop.xlane.xlu0 %573 }
 0x1a9   : > { %v631_v9 = vsel %vm630_vm3, %v609_v5, %v629_v7  ;;  %v613_v11 = vrot.slane %v574_v8, %v2478_v6 }
 0x1aa   : > { %v577_v14 = vpop.xlane.xlu1 %576 }
 0x1ab   : > { %v633_v16 = vsel %vm632_vm4, %v613_v11, %v631_v9  ;;  %v617_v17 = vrot.slane %v577_v14, %v2478_v6 }
 0x1ac   : > { %v580_v19 = vpop.xlane.xlu0 %579 }
 0x1ad   : > { %v621_v22 = vrot.slane %v580_v19, %v2478_v6  ;;  %v635_v23 = vsel %vm634_vm5, %v617_v17, %v633_v16 }
 0x1ae   : > { %v583_v24 = vpop.xlane.xlu1 %582 }
 0x1af   : > { %v625_v25 = vrot.slane %v583_v24, %v2478_v6  ;;  %v637_v28 = vsel %vm636_vm6, %v621_v22, %v635_v23 }
 0x1b1   : > { %v639_v29 = vsel %vm638_vm7, %v625_v25, %v637_v28 }
 0x1b2   : > { %v642_v30 = vsel %vm641_vm8, %v639_v29, -inf }
 0x1b3   : > { %643 = vmax.xlane.f32.xlu0 %v642_v30 }
 0x240   : > { %v644_v37 = vpop.xlane.xlu0 %643 }
 0x241   : > { %v649_v38 = vrot.slane %v644_v37, %v2485_v12  ;;  %v653_v39 = vrot.slane %v644_v37, %v652_v32  ;;  %v657_v40 = vrot.slane %v644_v37, %v656_v34  ;;  %v661_v42 = vrot.slane %v644_v37, %v660_v36 }
 0x242   : > { %v665_v50 = vrot.slane %v644_v37, %v664_v41  ;;  %v669_v55 = vrot.slane %v644_v37, %v668_v49  ;;  %v673_v59 = vrot.slane %v644_v37, %v672_v54  ;;  %v677_v0 = vrot.slane %v644_v37, %v676_v58 }
 0x243   : > { %v686_v43 = vsub.f32 %v562_v60, %v649_v38  ;;  %v687_v45 = vsub.f32 %v565_v62, %v653_v39  ;;  %v688_v46 = vsub.f32 %v568_v61, %v657_v40  ;;  %v689_v51 = vsub.f32 %v571_v2, %v661_v42 }
 0x244   : > { %v690_v56 = vsub.f32 %v574_v8, %v665_v50  ;;  %v691_v60 = vsub.f32 %v577_v14, %v669_v55  ;;  %v692_v1 = vsub.f32 %v580_v19, %v673_v59  ;;  %v693_v5 = vsub.f32 %v583_v24, %v677_v0 }
 0x245   : > { %v694_v47 = vmul.f32 1.442695, %v686_v43  ;;  %v696_v48 = vmul.f32 1.442695, %v687_v45  ;;  %v698_v53 = vmul.f32 1.442695, %v688_v46 }
 0x246   : > { %v700_v57 = vmul.f32 1.442695, %v689_v51  ;;  %v702_v61 = vmul.f32 1.442695, %v690_v56  ;;  %v704_v2 = vmul.f32 1.442695, %v691_v60 }
 0x247   : > { %1739 = vpow2.f32 %v694_v47  ;;  %v706_v7 = vmul.f32 1.442695, %v692_v1  ;;  %v708_v9 = vmul.f32 1.442695, %v693_v5 }
 0x248   : > { %1741 = vpow2.f32 %v696_v48 }
 0x249   : > { %1743 = vpow2.f32 %v698_v53 }
 0x24a   : > { %1745 = vpow2.f32 %v700_v57 }
 0x24b   : > { %1747 = vpow2.f32 %v702_v61 }
 0x24c   : > { %1749 = vpow2.f32 %v704_v2 }
 0x24d   : > { %1751 = vpow2.f32 %v706_v7 }
 0x24e   : > { %1753 = vpow2.f32 %v708_v9 }
 0x251   : > { %v1740_v62 = vpop.eup %1739 }
 0x252   : > { %v1742_v63 = vpop.eup %1741  ;;  %719 = vperm.xlu1 %1737, %v1740_v62  }
 0x253   : > { %722 = vperm.xlu0 %1738, %v1742_v63   ;;  %v1744_v4 = vpop.eup %1743 }
 0x254   : > { %v1746_v8 = vpop.eup %1745 }
 0x255   : > { %v1748_v11 = vpop.eup %1747 }
 0x256   : > { %725 = vperm.xlu1 %1737, %v1744_v4   ;;  %v1750_v14 = vpop.eup %1749 }
 0x257   : > { %v1752_v16 = vpop.eup %1751 }
 0x258   : > { %v1754_v17 = vpop.eup %1753 }
 0x25a   : > { %728 = vperm.xlu1 %1737, %v1746_v8  }
 0x25e   : > { %731 = vperm.xlu1 %1737, %v1748_v11  }
 0x262   : > { %734 = vperm.xlu1 %1737, %v1750_v14  }
 0x266   : > { %737 = vperm.xlu1 %1737, %v1752_v16  }
 0x26a   : > { %740 = vperm.xlu1 %1737, %v1754_v17  }
 0x2d1   : > { %v720_v19 = vpop.permute.xlu1 %719 }
 0x2d2   : > { %v723_v24 = vpop.permute.xlu0 %722  ;;  %v745_v30 = vrot.slane %v720_v19, %v2478_v6  ;;  %v941_v19 = vld [vmem:[#allocation7 + $0x10] sm:$0xff] }
 0x2d3   : > { %v749_v29 = vrot.slane %v723_v24, %v2478_v6  ;;  %v1042_v24 = vld [vmem:[#allocation10 + $0x20] sm:$0xff] }
 0x2d5   : > { %v726_v22 = vpop.permute.xlu1 %725  ;;  %v774_v40 = vsel %vm626_vm1, %v749_v29, %v745_v30  ;;  %v1044_v30 = vld [vmem:[#allocation10 + $0x30] sm:$0xff] }
 0x2d6   : > { %v753_v31 = vrot.slane %v726_v22, %v2478_v6  ;;  %v942_v22 = vld [vmem:[#allocation7 + $0x18] sm:$0xff] }
 0x2d7   : > { %v1566_v3 = vpack.c.bf16 %v942_v22, %v941_v19 }
 0x2d8   : > { %v775_v43 = vsel %vm628_vm2, %v753_v31, %v774_v40  ;;  %v1045_v31 = vld [vmem:[#allocation10 + $0x38] sm:$0xff] }
 0x2d9   : > { %v729_v23 = vpop.permute.xlu1 %728 }
 0x2da   : > { %v757_v37 = vrot.slane %v729_v23, %v2478_v6  ;;  %v1041_v23 = vld [vmem:[#allocation10 + $0x18] sm:$0xff] }
 0x2dc   : > { %v776_v46 = vsel %vm630_vm3, %v757_v37, %v775_v43  ;;  %v1578_v37 = vpack.c.bf16 %v1045_v31, %v1044_v30  ;;  %v1049_v43 = vld [vmem:[#allocation10 + $0x58] sm:$0xff] }
 0x2dd   : > { %v732_v25 = vpop.permute.xlu1 %731 }
 0x2de   : > { %v761_v38 = vrot.slane %v732_v25, %v2478_v6 }
 0x2e0   : > { %v777_v47 = vsel %vm632_vm4, %v761_v38, %v776_v46  ;;  %v1046_v38 = vld [vmem:[#allocation10 + $0x40] sm:$0xff] }
 0x2e1   : > { %v735_v28 = vpop.permute.xlu1 %734  ;;  %v1050_v46 = vld [vmem:[#allocation10 + $0x60] sm:$0xff] }
 0x2e2   : > { %v765_v42 = vrot.slane %v735_v28, %v2478_v6  ;;  %v1043_v28 = vld [vmem:[#allocation10 + $0x28] sm:$0xff] }
 0x2e3   : > { %v1575_v29 = vpack.c.bf16 %v1043_v28, %v1042_v24 }
 0x2e4   : > { %v778_v50 = vsel %vm634_vm5, %v765_v42, %v777_v47  ;;  %v1048_v42 = vld [vmem:[#allocation10 + $0x50] sm:$0xff]  ;;  %v1051_v47 = vld [vmem:[#allocation10 + $0x68] sm:$0xff] }
 0x2e5   : > { %v738_v39 = vpop.permute.xlu1 %737 }
 0x2e6   : > { %v769_v45 = vrot.slane %v738_v39, %v2478_v6  ;;  %v1047_v39 = vld [vmem:[#allocation10 + $0x48] sm:$0xff] }
 0x2e7   : > { %v1581_v40 = vpack.c.bf16 %v1047_v39, %v1046_v38 }
 0x2e8   : > { %v779_v53 = vsel %vm636_vm6, %v769_v45, %v778_v50  ;;  %v1584_v45 = vpack.c.bf16 %v1049_v43, %v1048_v42 }
 0x2e9   : > { %v741_v48 = vpop.permute.xlu1 %740 }
 0x2ea   : > { %v773_v51 = vrot.slane %v741_v48, %v2478_v6  ;;  %v1587_v48 = vpack.c.bf16 %v1051_v47, %v1050_v46 }
 0x2ec   : > { %v780_v55 = vsel %vm638_vm7, %v773_v51, %v779_v53 }
 0x2ed   : > { %v782_v56 = vsel %vm641_vm8, %v780_v55, 0.0 }
 0x2ee   : > { %783 = vadd.xlane.f32.xlu1 %v782_v56 }
 0x37b   : > { %v784_v57 = vpop.xlane.xlu1 %783 }
 0x37c   : > { %1755 = vrcp.f32 %v784_v57 }
 0x386   : > { %v1756_v59 = vpop.eup %1755 }
 0x387   : > { %v790_v60 = vrot.slane %v1756_v59, %v2485_v12  ;;  %v794_v0 = vrot.slane %v1756_v59, %v652_v32  ;;  %v798_v6 = vrot.slane %v1756_v59, %v656_v34  ;;  %v802_v5 = vrot.slane %v1756_v59, %v660_v36 }
 0x388   : > { %v806_v9 = vrot.slane %v1756_v59, %v664_v41  ;;  %v810_v32 = vrot.slane %v1756_v59, %v668_v49  ;;  %v814_v34 = vrot.slane %v1756_v59, %v672_v54  ;;  %v818_v36 = vrot.slane %v1756_v59, %v676_v58  ;;  %v940_v41 = vld [vmem:[#allocation7 + $0x8] sm:$0xff] }
 0x389   : > { %v827_v61 = vmul.f32 %v1740_v62, %v790_v60  ;;  %v828_v1 = vmul.f32 %v1742_v63, %v794_v0  ;;  %v829_v2 = vmul.f32 %v1744_v4, %v798_v6  ;;  %v830_v7 = vmul.f32 %v1746_v8, %v802_v5  ;;  %v939_v8 = vld [vmem:[#allocation7] sm:$0xff]  ;;  %v1039_v58 = vld [vmem:[#allocation10 + $0x8] sm:$0xff] }
 0x38a   : > { %v831_v12 = vmul.f32 %v1748_v11, %v806_v9  ;;  %v832_v62 = vmul.f32 %v1750_v14, %v810_v32  ;;  %v833_v63 = vmul.f32 %v1752_v16, %v814_v34  ;;  %v834_v4 = vmul.f32 %v1754_v17, %v818_v36  ;;  %v1038_v54 = vld [vmem:[#allocation10] sm:$0xff]  ;;  %v1040_v16 = vld [vmem:[#allocation10 + $0x10] sm:$0xff] }
 0x38b   : > { %837 = vperm.xlu0 %1738, %v827_v61   ;;  %v2087_v11 = vmov 0.0|0.0   ;;  %v1563_v49 = vpack.c.bf16 %v940_v41, %v939_v8  ;;  %v2089_v14 = vmov 0.0   ;;  %v1569_v17 = vpack.c.bf16 %v1039_v58, %v1038_v54 }
 0x38c   : > { %1562 = vmatprep.subr.bf16.mxu0 %v2087_v11  ;;  %1489 = vmatprep.mubr.msk.f32.mxu0 %vm2088_vm9, %v2089_v14  ;;  %v1572_v25 = vpack.c.bf16 %v1041_v23, %v1040_v16 }
 0x38d   : > { %1568 = vmatprep.subr.bf16.mxu1 %v2087_v11  ;;  %1524 = vmatprep.mubr.msk.f32.mxu1 %vm2088_vm9, %v2089_v14 }
 0x38e   : > { %1564 = vmatpush3.bf16.msra.mxu0 %v1563_v49  ;;  %1570 = vmatpush3.bf16.msra.mxu1 %v1569_v17 }
 0x38f   : > { %842 = vperm.xlu0 %1738, %v828_v1   ;;  %1565 = vmatprep.subr.bf16.mxu0 %v2087_v11 }
 0x390   : > { %1571 = vmatprep.subr.bf16.mxu1 %v2087_v11 }
 0x392   : > { %1567 = vmatpush3.bf16.msra.mxu0 %v1566_v3  ;;  %1573 = vmatpush3.bf16.msra.mxu1 %v1572_v25 }
 0x393   : > { %847 = vperm.xlu0 %1738, %v829_v2   ;;  %1592 = vmatprep.subr.bf16.mxu0 %v2087_v11 }
 0x394   : > { %1574 = vmatprep.subr.bf16.mxu1 %v2087_v11 }
 0x396   : > { %1576 = vmatpush3.bf16.msra.mxu1 %v1575_v29 }
 0x397   : > { %852 = vperm.xlu0 %1738, %v830_v7   ;;  %1577 = vmatprep.subr.bf16.mxu1 %v2087_v11 }
 0x39a   : > { %1579 = vmatpush3.bf16.msra.mxu1 %v1578_v37 }
 0x39b   : > { %857 = vperm.xlu0 %1738, %v831_v12   ;;  %1580 = vmatprep.subr.bf16.mxu1 %v2087_v11 }
 0x39e   : > { %1582 = vmatpush3.bf16.msra.mxu1 %v1581_v40 }
 0x39f   : > { %862 = vperm.xlu0 %1738, %v832_v62   ;;  %1583 = vmatprep.subr.bf16.mxu1 %v2087_v11 }
 0x3a2   : > { %1585 = vmatpush3.bf16.msra.mxu1 %v1584_v45 }
 0x3a3   : > { %867 = vperm.xlu0 %1738, %v833_v63   ;;  %1586 = vmatprep.subr.bf16.mxu1 %v2087_v11 }
 0x3a6   : > { %1588 = vmatpush3.bf16.msra.mxu1 %v1587_v48 }
 0x3a7   : > { %872 = vperm.xlu0 %1738, %v834_v4   ;;  %1589 = vmatprep.subr.bf16.mxu1 %v2087_v11 }
 0x40a   : > { %v838_v50 = vpop.permute.xlu0 %837 }
 0x40b   : > { %v875_v56 = vmul.f32 %v1425_v15, %v838_v50 }
 0x40d   : > { %v883_v0 = vsel %vm559_vm0, %v875_v56, 0.0 }
 0x40e   : > { %v843_v51 = vpop.permute.xlu0 %842  ;;  %v884_v5 = vrot.slane %v883_v0, 4 }
 0x40f   : > { %v876_v53 = vmul.f32 %v1426_v21, %v843_v51 }
 0x410   : > { %v885_v32 = vadd.f32 %v884_v5, %v883_v0 }
 0x411   : > { %v890_v59 = vsel %vm559_vm0, %v876_v53, 0.0 }
 0x412   : > { %v848_v55 = vpop.permute.xlu0 %847  ;;  %v891_v6 = vrot.slane %v890_v59, 4  ;;  %v886_v41 = vrot.slane %v885_v32, 2 }
 0x413   : > { %v877_v57 = vmul.f32 %v1429_v20, %v848_v55 }
 0x414   : > { %v892_v7 = vadd.f32 %v891_v6, %v890_v59  ;;  %v887_v18 = vadd.f32 %v886_v41, %v885_v32  ;;  %v1133_v32 = vld [vmem:[#allocation13 + $0x8] sm:$0xff] }
 0x415   : > { %v897_v60 = vsel %vm559_vm0, %v877_v57, 0.0 }
 0x416   : > { %v853_v61 = vpop.permute.xlu0 %852  ;;  %v898_v2 = vrot.slane %v897_v60, 4  ;;  %v888_v39 = vrot.slane %v887_v18, 1 }
 0x417   : > { %v878_v1 = vmul.f32 %v1430_v26, %v853_v61  ;;  %v893_v26 = vrot.slane %v892_v7, 2 }
 0x418   : > { %v899_v9 = vadd.f32 %v898_v2, %v897_v60  ;;  %v889_v53 = vadd.f32 %v888_v39, %v887_v18  ;;  %v1414_v18 = vld [vmem:[#allocation8] ss:$0 sm:$0xff] }
 0x419   : > { %v904_v21 = vsel %vm559_vm0, %v878_v1, 0.0  ;;  %v894_v54 = vadd.f32 %v893_v26, %v892_v7  ;;  %v1053_v7 = vld [vmem:[#allocation10 + $0x78] sm:$0xff]  ;;  %v1136_v26 = vld [vmem:[#allocation13 + $0x20] sm:$0xff] }
 0x41a   : > { %v905_v10 = vrot.slane %v904_v21, 4  ;;  %v858_v15 = vpop.permute.xlu0 %857  ;;  %v900_v4 = vrot.slane %v899_v9, 2 }
 0x41b   : > { %v879_v20 = vmul.f32 %v1433_v27, %v858_v15  ;;  %v895_v30 = vrot.slane %v894_v54, 1 }
 0x41c   : > { %v906_v62 = vadd.f32 %v905_v10, %v904_v21  ;;  %v901_v16 = vadd.f32 %v900_v4, %v899_v9 }
 0x41d   : > { %v911_v12 = vsel %vm559_vm0, %v879_v20, 0.0  ;;  %v896_v46 = vadd.f32 %v895_v30, %v894_v54  ;;  %v1052_v20 = vld [vmem:[#allocation10 + $0x70] sm:$0xff] }
 0x41e   : > { %v912_v34 = vrot.slane %v911_v12, 4  ;;  %v863_v63 = vpop.permute.xlu0 %862  ;;  %v907_v19 = vrot.slane %v906_v62, 2  ;;  %v902_v38 = vrot.slane %v901_v16, 1  ;;  %v1590_v9 = vpack.c.bf16 %v1053_v7, %v1052_v20 }
 0x41f   : > { %v880_v13 = vmul.f32 %v1434_v35, %v863_v63  ;;  %v958_v57 = vsel %vm626_vm1, %v896_v46, %v889_v53  ;;  %v1135_v63 = vld [vmem:[#allocation13 + $0x18] sm:$0xff] }
 0x420   : > { %v913_v36 = vadd.f32 %v912_v34, %v911_v12  ;;  %v908_v35 = vadd.f32 %v907_v19, %v906_v62  ;;  %v903_v51 = vadd.f32 %v902_v38, %v901_v16  ;;  %v1132_v12 = vld [vmem:[#allocation13] sm:$0xff]  ;;  %v1134_v62 = vld [vmem:[#allocation13 + $0x10] sm:$0xff]  ;;  %1591 = vmatpush3.bf16.msra.mxu1 %v1590_v9  ;;  %v1145_v16 = vld [vmem:[#allocation13 + $0x68] sm:$0xff] }
 0x421   : > { %v918_v8 = vsel %vm559_vm0, %v880_v13, 0.0  ;;  %v1593_v34 = vpack.c.bf16 %v1133_v32, %v1132_v12  ;;  %v1596_v13 = vpack.c.bf16 %v1135_v63, %v1134_v62  ;;  %v1140_v19 = vld [vmem:[#allocation13 + $0x40] sm:$0xff] }
 0x422   : > { %v919_v49 = vrot.slane %v918_v8, 4  ;;  %v868_v27 = vpop.permute.xlu0 %867  ;;  %v914_v22 = vrot.slane %v913_v36, 2  ;;  %v909_v40 = vrot.slane %v908_v35, 1  ;;  %v959_v61 = vsel %vm628_vm2, %v903_v51, %v958_v57 }
 0x423   : > { %v881_v3 = vmul.f32 %v1437_v44, %v868_v27 }
 0x424   : > { %v920_v58 = vadd.f32 %v919_v49, %v918_v8  ;;  %v915_v28 = vadd.f32 %v914_v22, %v913_v36  ;;  %v910_v55 = vadd.f32 %v909_v40, %v908_v35  ;;  %v1137_v36 = vld [vmem:[#allocation13 + $0x28] sm:$0xff]  ;;  %v1139_v8 = vld [vmem:[#allocation13 + $0x38] sm:$0xff]  ;;  %v1142_v22 = vld [vmem:[#allocation13 + $0x50] sm:$0xff] }
 0x425   : > { %v925_v17 = vsel %vm559_vm0, %v881_v3, 0.0  ;;  %v1599_v4 = vpack.c.bf16 %v1137_v36, %v1136_v26  ;;  %v1141_v49 = vld [vmem:[#allocation13 + $0x48] sm:$0xff]  ;;  %v1143_v3 = vld [vmem:[#allocation13 + $0x58] sm:$0xff] }
 0x426   : > { %v921_v23 = vrot.slane %v920_v58, 2  ;;  %v926_v25 = vrot.slane %v925_v17, 4  ;;  %v873_v24 = vpop.permute.xlu0 %872  ;;  %v916_v45 = vrot.slane %v915_v28, 1  ;;  %v960_v1 = vsel %vm630_vm3, %v910_v55, %v959_v61 }
 0x427   : > { %v882_v29 = vmul.f32 %v1438_v52, %v873_v24  ;;  %v1605_v27 = vpack.c.bf16 %v1141_v49, %v1140_v19  ;;  %v1608_v54 = vpack.c.bf16 %v1143_v3, %v1142_v22 }
 0x428   : > { %v922_v31 = vadd.f32 %v921_v23, %v920_v58  ;;  %v927_v37 = vadd.f32 %v926_v25, %v925_v17  ;;  %v917_v56 = vadd.f32 %v916_v45, %v915_v28  ;;  %v1144_v58 = vld [vmem:[#allocation13 + $0x60] sm:$0xff]  ;;  %v1146_v28 = vld [vmem:[#allocation13 + $0x70] sm:$0xff] }
 0x429   : > { %v932_v44 = vsel %vm559_vm0, %v882_v29, 0.0  ;;  %v1611_v17 = vpack.c.bf16 %v1145_v16, %v1144_v58  ;;  %v1147_v29 = vld [vmem:[#allocation13 + $0x78] sm:$0xff] }
 0x42a   : > { %v928_v42 = vrot.slane %v927_v37, 2  ;;  %v933_v43 = vrot.slane %v932_v44, 4  ;;  %v923_v47 = vrot.slane %v922_v31, 1  ;;  %v961_v2 = vsel %vm632_vm4, %v917_v56, %v960_v1 }
 0x42b   : > { %v1614_v30 = vpack.c.bf16 %v1147_v29, %v1146_v28 }
 0x42c   : > { %v929_v48 = vadd.f32 %v928_v42, %v927_v37  ;;  %v934_v50 = vadd.f32 %v933_v43, %v932_v44  ;;  %v924_v59 = vadd.f32 %v923_v47, %v922_v31  ;;  %v1416_v31 = vld [vmem:[#allocation11] ss:$0 sm:$0xff] }
 0x42e   : > { %v930_v33 = vrot.slane %v929_v48, 1  ;;  %v935_v52 = vrot.slane %v934_v50, 2  ;;  %v962_v5 = vsel %vm634_vm5, %v924_v59, %v961_v2 }
 0x430   : > { %v936_v60 = vadd.f32 %v935_v52, %v934_v50  ;;  %v931_v0 = vadd.f32 %v930_v33, %v929_v48 }
 0x432   : > { %v937_v6 = vrot.slane %v936_v60, 1  ;;  %v963_v10 = vsel %vm636_vm6, %v931_v0, %v962_v5 }
 0x434   : > { %v938_v21 = vadd.f32 %v937_v6, %v936_v60 }
 0x436   : > { %v964_v15 = vsel %vm638_vm7, %v938_v21, %v963_v10 }
 0x437   : > { %1490 = vmatmul.mubr.msk.f32.vlgmr.msra.gmra.mrb[0].mxu0 %vm559_vm0, %v964_v15 }
 0x438   : > { %1559 = vmatprep.mubr.msk.f32.mxu0 %vm2088_vm9, %v2089_v14  ;;  %1594 = vmatpush3.bf16.msra.mxu0 %v1593_v34  ;;  %v1138_v14 = vld [vmem:[#allocation13 + $0x30] sm:$0xff] }
 0x439   : > { %1595 = vmatprep.subr.bf16.mxu0 %v2087_v11  ;;  %v1602_v41 = vpack.c.bf16 %v1139_v8, %v1138_v14 }
 0x43c   : > { %1597 = vmatpush3.bf16.msra.mxu0 %v1596_v13 }
 0x43d   : > { %1598 = vmatprep.subr.bf16.mxu0 %v2087_v11 }
 0x440   : > { %1600 = vmatpush3.bf16.msra.mxu0 %v1599_v4 }
 0x441   : > { %1601 = vmatprep.subr.bf16.mxu0 %v2087_v11 }
 0x444   : > { %1603 = vmatpush3.bf16.msra.mxu0 %v1602_v41 }
 0x445   : > { %1604 = vmatprep.subr.bf16.mxu0 %v2087_v11 }
 0x448   : > { %1606 = vmatpush3.bf16.msra.mxu0 %v1605_v27 }
 0x449   : > { %1607 = vmatprep.subr.bf16.mxu0 %v2087_v11 }
 0x44c   : > { %1609 = vmatpush3.bf16.msra.mxu0 %v1608_v54 }
 0x44d   : > { %1610 = vmatprep.subr.bf16.mxu0 %v2087_v11 }
 0x450   : > { %1612 = vmatpush3.bf16.msra.mxu0 %v1611_v17 }
 0x451   : > { %1613 = vmatprep.subr.bf16.mxu0 %v2087_v11  ;;  %v1417_v11 = vld [vmem:[#allocation14] ss:$0 sm:$0xff] }
 0x454   : > { %1615 = vmatpush3.bf16.msra.mxu0 %v1614_v30 }
 0x50a   : > { %v1033_v35 = vpop.f32.mrb[0].mxu0 }
 0x50b   : > { %v1034_v23 = vadd.f32 %v1414_v18, %v1033_v35  ;;  %v1491_v25 = vpop.f32.mrb[1].mxu0 }
 0x50d   : > { %v1037_v24 = vmax.f32 %v1034_v23, 0.0 }
 0x50f   : > { %1525 = vmatmul.mubr.f32.vlgmr.msra.gmra.mrb[0].mxu1 %v1037_v24 }
 0x5e2   : > { %v1127_v37 = vpop.f32.mrb[0].mxu1 }
 0x5e3   : > { %v1128_v38 = vadd.f32 %v1416_v31, %v1127_v37  ;;  %v1526_v44 = vpop.f32.mrb[1].mxu1 }
 0x5e5   : > { %v1131_v39 = vmax.f32 %v1128_v38, 0.0 }
 0x5e7   : > { %1560 = vmatmul.mubr.f32.vlgmr.msra.gmra.mrb[2].mxu0 %v1131_v39 }
 0x6ba   : > { %v1221_v40 = vpop.f32.mrb[2].mxu0 }
 0x6bb   : > { %v1222_v42 = vadd.f32 %v1417_v11, %v1221_v40  ;;  %v1561_v43 = vpop.f32.mrb[3].mxu0 }
 0x6bd   : > { %1225 = vst [vmem:[%s441_s13] sm:$0xff] %v1222_v42 }
 0x6be   : > { %1998 = shalt.err (!%p1995_p3)
}
 0x6bf   : > { %s1999_s10 = scalar_lea.hbm %s2666_s2, 128  ;;  %s2003_s12 = scalar_lea.hbm %s2718_s8, 256 }
 0x6c0   : > { %p2000_p12 = scmp.ne.s32.totalorder %s2666_s2, %s1999_s10  ;;  %p2004_p0 = scmp.lt.u32.totalorder %s2666_s2, %s2718_s8 }
 0x6c1   : > { %p2005_p6 = scmp.lt.u32.totalorder %s2003_s12, %s1999_s10  ;;  %p2007_p4 = scmp.lt.u32.totalorder %s1999_s10, %s2666_s2 }
 0x6c2   : > { %p2001_p1 = pnand %p2000_p12, %p2752_p10 }
 0x6c3   : > { %p2006_p2 = por %p2005_p6, %p2004_p0 }
 0x6c4   : > { %p2002_p13 = pneg %p2001_p1 }
 0x6c5   : > { %p2008_p5 = por %p2007_p4, %p2006_p2 }
 0x6c7   : > { %p2009_p7 = pnand %p2008_p5, %p2002_p13 }
 0x6c9   : > { %2012 = shalt.err (!%p2009_p7)
}
 0x6ca   : > { %1644 = dma.vmem_to_hbm [thread:$0]  (%p2752_p10), %s2668_s17, 128, %s2666_s2, %s1227_s4  }
 0x6cb PF: > { %s1252_s22 = sand.u32 1, %s2059_s27   ;;  %p2753_p9 = scmp.ne.s32.totalorder %s2739_s16, 0 }
 0x6cc   : > { %p2754_p8 = scmp.ge.s32.totalorder %s2071_s30, 2  ;;  %s1253_s24 = scalar_lea.sflag [#allocation4], %s1252_s22 }
 0x6ce   : > { %p1673_p11 = pnand %p2754_p8, %p2753_p9 }
 0x6d0   : > { %2054 = dma.done.wait (!%p1673_p11), %s1253_s24, 128  }
 0x6d1   : > { %2056 = vsyncadd (!%p1673_p11), %s1253_s24, 4294967168  ;;  %p27_p3 = scmp.ge.s32.totalorder %s2323_s15, 4   ;;  %s2755_s27 = smov %s2063_s28 }
 0x6d2   : > { %s2756_s28 = smov %s2067_s29  ;;  %s2757_s29 = smov %s2334_s25 }
 0x6d3   : > { %s2758_s30 = smov %s2323_s15  ;;  %29 = sbr.rel (!%p27_p3) target bundleno = 15 (0xf), region = 134 }
 0x6da   :  { %1258 = vsyncpa [#allocation3], 1 }
 0x6db   :  { %1260 = vsyncpa [#allocation3 + $0x1], 1 }
 0x6dc   :  { %1261 = vsyncpa [#allocation6], 1 }
 0x6dd   :  { %1263 = vsyncpa [#allocation6 + $0x1], 1 }
 0x6de   :  { %1264 = vsyncpa [#allocation9], 1 }
 0x6df   :  { %1265 = vsyncpa [#allocation12], 1 }
 0x6e0   :  { %1266 = vsyncpa [#allocation15], 1 }
 0x6e1   :  { %1267 = vsyncpa [#allocation4], 1 }
 0x6e2   :  { %1269 = vsyncpa [#allocation4 + $0x1], 1 }

</bundles_post_ra>
